<compile_context>
chip_gen: v7x
topology: tpu7x:2x2x1
jax: 0.10.0
libtpu: 0.0.40
codegen_flags: <defaults>
</compile_context>

<pallas_src>
import functools
import math

import jax
import jax.numpy as jnp
from jax import lax
from jax.experimental import pallas as pl
from jax.experimental.pallas import tpu as pltpu


# ------------------------------ Pallas kernel ------------------------------ #

def _bert_output_kernel(x_ref, w_ref, b_ref, res_ref, g_ref, beta_ref,
                        o_ref, acc_ref, *, eps):
    """One (row-tile, k-tile) step of: LayerNorm((x @ W + b) + residual)."""
    k = pl.program_id(1)

    @pl.when(k == 0)
    def _init():
        acc_ref[...] = jnp.zeros_like(acc_ref)

    acc_ref[...] += jnp.dot(x_ref[...], w_ref[...],
                            preferred_element_type=jnp.float32)

    @pl.when(k == pl.num_programs(1) - 1)
    def _finalize():
        # dense bias + residual add.
        # TODO(synk): hidden_dropout_prob dropout omitted (eval-mode identity).
        y = (acc_ref[...]
             + b_ref[...].astype(jnp.float32)
             + res_ref[...].astype(jnp.float32))
        # LayerNorm over the hidden (last) dim; biased variance like torch.
        mean = jnp.mean(y, axis=-1, keepdims=True)
        yc = y - mean
        var = jnp.mean(yc * yc, axis=-1, keepdims=True)
        norm = yc * lax.rsqrt(var + eps)          # EUP rsqrt, off the VPU path
        o_ref[...] = (norm * g_ref[...].astype(jnp.float32)
                      + beta_ref[...].astype(jnp.float32)).astype(o_ref.dtype)


# ------------------------------- Tiling picks ------------------------------ #

def _round_up(x, m):
    return ((x + m - 1) // m) * m


def _pick_k_tile(k_dim, target):
    """K tile: multiple of 128 dividing k_dim, else the full extent (legal)."""
    if k_dim % 128 == 0:
        tk = max(128, min(target, k_dim))
        tk -= tk % 128
        while k_dim % tk != 0:
            tk -= 128
        return max(tk, 128)
    return k_dim


def _vmem_bytes(tm, tk, H, in_bytes, out_bytes):
    """Rough double-buffered VMEM footprint for this pipeline."""
    x = 2 * tm * tk * in_bytes
    w = 2 * tk * H * in_bytes
    res = 2 * tm * H * in_bytes
    small = 3 * 2 * H * in_bytes            # bias / gamma / beta
    out = 2 * tm * H * out_bytes
    acc = tm * H * 4                        # f32 accumulator scratch
    return x + w + res + small + out + acc


def _pick_tiles(N, I, H, in_bytes, out_bytes, budget=32 << 20):
    """Pick (tm, tk) as large as fits the VMEM budget."""
    tm = min(512, _round_up(N, 8))
    tk = _pick_k_tile(I, 1024)
    while _vmem_bytes(tm, tk, H, in_bytes, out_bytes) > budget:
        if tm > 64:
            tm //= 2
        elif tk > 128 and I % 128 == 0:
            tk = _pick_k_tile(I, tk // 2)
        else:
            break
    tm = max(8, tm - (tm % 8))
    return tm, tk


# ------------------------------ Module wrapper ------------------------------ #

def bert_output(hidden_states, input_tensor, params, *, eps=1e-12):
    """Mirrors BertOutput.forward (eval mode).

    hidden_states: (B, S, I)  -- intermediate activations
    input_tensor : (B, S, H)  -- residual input
    params: w (I, H) = torch W^T, b (H,)|(1, H), gamma/beta (H,)|(1, H)
    """
    B, S, I = hidden_states.shape
    H = input_tensor.shape[-1]
    N = B * S

    x = hidden_states.reshape(N, I)
    res = input_tensor.reshape(N, H)
    w = params["w"]
    b = jnp.reshape(params["b"], (1, H))
    gamma = jnp.reshape(params["gamma"], (1, H))
    beta = jnp.reshape(params["beta"], (1, H))

    in_bytes = jnp.dtype(hidden_states.dtype).itemsize
    out_bytes = jnp.dtype(input_tensor.dtype).itemsize
    tm, tk = _pick_tiles(N, I, H, in_bytes, out_bytes)

    # Pad the row dim so every row tile is full (LayerNorm keeps full H, so
    # padded rows are just normalized garbage we slice away; no NaN risk).
    N_pad = _round_up(N, tm)
    if N_pad != N:
        x = jnp.pad(x, ((0, N_pad - N), (0, 0)))
        res = jnp.pad(res, ((0, N_pad - N), (0, 0)))

    grid = (N_pad // tm, pl.cdiv(I, tk))

    kernel = functools.partial(_bert_output_kernel, eps=eps)
    out = pl.pallas_call(
        kernel,
        out_shape=jax.ShapeDtypeStruct((N_pad, H), input_tensor.dtype),
        grid_spec=pltpu.PrefetchScalarGridSpec(
            num_scalar_prefetch=0,
            grid=grid,
            in_specs=[
                pl.BlockSpec((tm, tk), lambda i, k: (i, k)),   # x
                pl.BlockSpec((tk, H), lambda i, k: (k, 0)),    # W
                pl.BlockSpec((1, H), lambda i, k: (0, 0)),     # bias
                pl.BlockSpec((tm, H), lambda i, k: (i, 0)),    # residual
                pl.BlockSpec((1, H), lambda i, k: (0, 0)),     # gamma
                pl.BlockSpec((1, H), lambda i, k: (0, 0)),     # beta
            ],
            out_specs=pl.BlockSpec((tm, H), lambda i, k: (i, 0)),
            scratch_shapes=[pltpu.VMEM((tm, H), jnp.float32)],
        ),
        compiler_params=pltpu.CompilerParams(
            dimension_semantics=("parallel", "arbitrary"),
            vmem_limit_bytes=48 << 20,   # headroom vs. v7x's 64 MiB physical VMEM
        ),
    )(x, w, b, res, gamma, beta)

    if N_pad != N:
        out = out[:N]
    return out.reshape(B, S, H)


# ---------------------------------- Main ----------------------------------- #

if __name__ == "__main__":
    # Small config consistent with the module: hidden=32, intermediate=4*hidden,
    # seq=8, batch=2.
    B, S, H = 2, 8, 32
    I = 4 * H
    EPS = 1e-12

    key = jax.random.PRNGKey(0)
    ks = jax.random.split(key, 6)

    bound = 1.0 / math.sqrt(I)
    w = jax.random.uniform(ks[0], (I, H), jnp.float32, -bound, bound)   # torch W^T
    b = jax.random.uniform(ks[1], (1, H), jnp.float32, -bound, bound)
    gamma = 1.0 + 0.1 * jax.random.normal(ks[2], (1, H), jnp.float32)
    beta = 0.1 * jax.random.normal(ks[3], (1, H), jnp.float32)

    hidden_states = jax.random.normal(ks[4], (B, S, I), jnp.float32)
    input_tensor = jax.random.normal(ks[5], (B, S, H), jnp.float32)

    params = dict(w=w, b=b, gamma=gamma, beta=beta)

    out = bert_output(hidden_states, input_tensor, params, eps=EPS)
    jax.block_until_ready(out)

    # Pure-JAX reference (matches torch BertOutput.forward in eval mode).
    def ref(hs, it):
        y = hs.reshape(-1, I) @ w + b + it.reshape(-1, H)
        mean = y.mean(-1, keepdims=True)
        var = ((y - mean) ** 2).mean(-1, keepdims=True)
        ln = (y - mean) / jnp.sqrt(var + EPS)
        return (ln * gamma + beta).reshape(B, S, H)

    ref_out = ref(hidden_states, input_tensor)
    assert jnp.allclose(out, ref_out, atol=1e-5, rtol=1e-5), (
        float(jnp.max(jnp.abs(out - ref_out))))

    print("KERNEL_OK")
</pallas_src>

<mosaic_0001>
module attributes {stable_mosaic.version = 11 : i64} {
  func.func @_bert_output_kernel(%arg0: i32, %arg1: i32, %arg2: memref<16x128xf32, #tpu.memory_space<vmem>>, %arg3: memref<128x32xf32, #tpu.memory_space<vmem>>, %arg4: memref<1x32xf32, #tpu.memory_space<vmem>>, %arg5: memref<16x32xf32, #tpu.memory_space<vmem>>, %arg6: memref<1x32xf32, #tpu.memory_space<vmem>>, %arg7: memref<1x32xf32, #tpu.memory_space<vmem>>, %arg8: memref<16x32xf32, #tpu.memory_space<vmem>>, %arg9: memref<16x32xf32, #tpu.memory_space<vmem>>) attributes {dimension_semantics = [#tpu.dimension_semantics<parallel>, #tpu.dimension_semantics<arbitrary>], iteration_bounds = array<i64: 1, 1>, scalar_prefetch = 0 : i64, scratch_operands = 1 : i64, tpu.core_type = #tpu.core_type<tc>, window_params = [{transform_indices = @transform_0, window_bounds = array<i64: 16, 128>}, {transform_indices = @transform_1, window_bounds = array<i64: 128, 32>}, {pipeline_mode = #tpu.pipeline_mode<synchronous>, transform_indices = @transform_2, window_bounds = array<i64: 1, 32>}, {transform_indices = @transform_3, window_bounds = array<i64: 16, 32>}, {pipeline_mode = #tpu.pipeline_mode<synchronous>, transform_indices = @transform_4, window_bounds = array<i64: 1, 32>}, {pipeline_mode = #tpu.pipeline_mode<synchronous>, transform_indices = @transform_5, window_bounds = array<i64: 1, 32>}, {transform_indices = @transform_6, window_bounds = array<i64: 16, 32>}]} {
    %c0_i32 = arith.constant 0 : i32
    %0 = arith.cmpi eq, %arg1, %c0_i32 : i32
    %1 = arith.extui %0 : i1 to i32
    %c0_i32_0 = arith.constant 0 : i32
    %2 = arith.cmpi ne, %1, %c0_i32_0 : i32
    scf.if %2 {
      %cst_10 = arith.constant 0.000000e+00 : f32
      %12 = vector.broadcast %cst_10 : f32 to vector<16x32xf32>
      %c0_11 = arith.constant 0 : index
      %c0_12 = arith.constant 0 : index
      %13 = vector.load %arg9[%c0_11, %c0_12] : memref<16x32xf32, #tpu.memory_space<vmem>>, vector<16x32xf32>
      tpu.vector_store %arg9[%c0_11, %c0_12], %12 {strides = array<i32>} : memref<16x32xf32, #tpu.memory_space<vmem>>, vector<16x32xf32>,
    } else {
    }
    %c0 = arith.constant 0 : index
    %c0_1 = arith.constant 0 : index
    %3 = vector.load %arg9[%c0, %c0_1] : memref<16x32xf32, #tpu.memory_space<vmem>>, vector<16x32xf32>
    %c0_2 = arith.constant 0 : index
    %c0_3 = arith.constant 0 : index
    %4 = vector.load %arg2[%c0_2, %c0_3] : memref<16x128xf32, #tpu.memory_space<vmem>>, vector<16x128xf32>
    %c0_4 = arith.constant 0 : index
    %c0_5 = arith.constant 0 : index
    %5 = vector.load %arg3[%c0_4, %c0_5] : memref<128x32xf32, #tpu.memory_space<vmem>>, vector<128x32xf32>
    %cst = arith.constant dense<0.000000e+00> : vector<16x32xf32>
    %6 = tpu.matmul %4, %5, %cst {dimension_numbers = #tpu.dot_dimension_numbers<[1], [0], [0], [1], [0, 0, 1, 1], [], []>} : vector<16x128xf32>, vector<128x32xf32>, vector<16x32xf32> -> vector<16x32xf32>
    %7 = arith.addf %3, %6 : vector<16x32xf32>
    %c0_6 = arith.constant 0 : index
    %c0_7 = arith.constant 0 : index
    %8 = vector.load %arg9[%c0_6, %c0_7] : memref<16x32xf32, #tpu.memory_space<vmem>>, vector<16x32xf32>
    tpu.vector_store %arg9[%c0_6, %c0_7], %7 {strides = array<i32>} : memref<16x32xf32, #tpu.memory_space<vmem>>, vector<16x32xf32>,
    %c0_i32_8 = arith.constant 0 : i32
    %9 = arith.cmpi eq, %arg1, %c0_i32_8 : i32
    %10 = arith.extui %9 : i1 to i32
    %c0_i32_9 = arith.constant 0 : i32
    %11 = arith.cmpi ne, %10, %c0_i32_9 : i32
    scf.if %11 {
      %c0_10 = arith.constant 0 : index
      %c0_11 = arith.constant 0 : index
      %12 = vector.load %arg9[%c0_10, %c0_11] : memref<16x32xf32, #tpu.memory_space<vmem>>, vector<16x32xf32>
      %c0_12 = arith.constant 0 : index
      %c0_13 = arith.constant 0 : index
      %13 = vector.load %arg4[%c0_12, %c0_13] : memref<1x32xf32, #tpu.memory_space<vmem>>, vector<1x32xf32>
      %14 = vector.broadcast %13 : vector<1x32xf32> to vector<16x32xf32>
      %15 = arith.addf %12, %14 : vector<16x32xf32>
      %c0_14 = arith.constant 0 : index
      %c0_15 = arith.constant 0 : index
      %16 = vector.load %arg5[%c0_14, %c0_15] : memref<16x32xf32, #tpu.memory_space<vmem>>, vector<16x32xf32>
      %17 = arith.addf %15, %16 : vector<16x32xf32>
      %cst_16 = arith.constant dense<0.000000e+00> : vector<16xf32>
      %18 = vector.multi_reduction <add>, %17, %cst_16 [1] : vector<16x32xf32> to vector<16xf32>
      %19 = vector.shape_cast %18 : vector<16xf32> to vector<16x1xf32>
      %cst_17 = arith.constant 3.200000e+01 : f32
      %20 = vector.broadcast %cst_17 : f32 to vector<16x1xf32>
      %21 = arith.divf %19, %20 : vector<16x1xf32>
      %22 = vector.broadcast %21 : vector<16x1xf32> to vector<16x32xf32>
      %23 = arith.subf %17, %22 : vector<16x32xf32>
      %24 = arith.mulf %23, %23 : vector<16x32xf32>
      %cst_18 = arith.constant dense<0.000000e+00> : vector<16xf32>
      %25 = vector.multi_reduction <add>, %24, %cst_18 [1] : vector<16x32xf32> to vector<16xf32>
      %26 = vector.shape_cast %25 : vector<16xf32> to vector<16x1xf32>
      %cst_19 = arith.constant 3.200000e+01 : f32
      %27 = vector.broadcast %cst_19 : f32 to vector<16x1xf32>
      %28 = arith.divf %26, %27 : vector<16x1xf32>
      %cst_20 = arith.constant 9.99999996E-13 : f32
      %29 = vector.broadcast %cst_20 : f32 to vector<16x1xf32>
      %30 = arith.addf %28, %29 : vector<16x1xf32>
      %31 = math.rsqrt %30 : vector<16x1xf32>
      %32 = vector.broadcast %31 : vector<16x1xf32> to vector<16x32xf32>
      %33 = arith.mulf %23, %32 : vector<16x32xf32>
      %c0_21 = arith.constant 0 : index
      %c0_22 = arith.constant 0 : index
      %34 = vector.load %arg6[%c0_21, %c0_22] : memref<1x32xf32, #tpu.memory_space<vmem>>, vector<1x32xf32>
      %35 = vector.broadcast %34 : vector<1x32xf32> to vector<16x32xf32>
      %36 = arith.mulf %33, %35 : vector<16x32xf32>
      %c0_23 = arith.constant 0 : index
      %c0_24 = arith.constant 0 : index
      %37 = vector.load %arg7[%c0_23, %c0_24] : memref<1x32xf32, #tpu.memory_space<vmem>>, vector<1x32xf32>
      %38 = vector.broadcast %37 : vector<1x32xf32> to vector<16x32xf32>
      %39 = arith.addf %36, %38 : vector<16x32xf32>
      %c0_25 = arith.constant 0 : index
      %c0_26 = arith.constant 0 : index
      %40 = vector.load %arg8[%c0_25, %c0_26] : memref<16x32xf32, #tpu.memory_space<vmem>>, vector<16x32xf32>
      tpu.vector_store %arg8[%c0_25, %c0_26], %39 {strides = array<i32>} : memref<16x32xf32, #tpu.memory_space<vmem>>, vector<16x32xf32>,
    } else {
    }
    return
  }
  func.func @transform_0(%arg0: i32, %arg1: i32) -> (i32, i32) {
    %c0_i32 = arith.constant 0 : i32
    return %arg0, %arg1 : i32, i32
  }
  func.func @transform_1(%arg0: i32, %arg1: i32) -> (i32, i32) {
    %c0_i32 = arith.constant 0 : i32
    %c0_i32_0 = arith.constant 0 : i32
    return %arg1, %c0_i32 : i32, i32
  }
  func.func @transform_2(%arg0: i32, %arg1: i32) -> (i32, i32) {
    %c0_i32 = arith.constant 0 : i32
    %c0_i32_0 = arith.constant 0 : i32
    %c0_i32_1 = arith.constant 0 : i32
    return %c0_i32, %c0_i32_0 : i32, i32
  }
  func.func @transform_3(%arg0: i32, %arg1: i32) -> (i32, i32) {
    %c0_i32 = arith.constant 0 : i32
    %c0_i32_0 = arith.constant 0 : i32
    return %arg0, %c0_i32 : i32, i32
  }
  func.func @transform_4(%arg0: i32, %arg1: i32) -> (i32, i32) {
    %c0_i32 = arith.constant 0 : i32
    %c0_i32_0 = arith.constant 0 : i32
    %c0_i32_1 = arith.constant 0 : i32
    return %c0_i32, %c0_i32_0 : i32, i32
  }
  func.func @transform_5(%arg0: i32, %arg1: i32) -> (i32, i32) {
    %c0_i32 = arith.constant 0 : i32
    %c0_i32_0 = arith.constant 0 : i32
    %c0_i32_1 = arith.constant 0 : i32
    return %c0_i32, %c0_i32_0 : i32, i32
  }
  func.func @transform_6(%arg0: i32, %arg1: i32) -> (i32, i32) {
    %c0_i32 = arith.constant 0 : i32
    %c0_i32_0 = arith.constant 0 : i32
    return %arg0, %c0_i32 : i32, i32
  }
}

</mosaic_0001>

<bundles_post_ra>
// kernel: tpu_custom_call.1
= control target key start
LH: loop header
LB: loop body
LE: loop exit
PB: predicated region body
PF: predicated region fallthrough
CT: control target
= control target key end

     0   :  { %vm28_vm0 = vcmask 261120   ;;  %v332_v5 = vmov 0.0   ;;  %s462_s0 = inlined_call_operand.vmem [shape: f32[16,128], index: 0, kind: input, shape index: {}]   ;;  %s463_s1 = inlined_call_operand.vmem [shape: f32[128,32], index: 1, kind: input, shape index: {}]   ;;  %s464_s2 = inlined_call_operand.vmem [shape: f32[1,32], index: 2, kind: input, shape index: {}]   ;;  %s465_s3 = inlined_call_operand.vmem [shape: f32[16,32], index: 3, kind: input, shape index: {}]   ;;  %s466_s4 = inlined_call_operand.vmem [shape: f32[1,32], index: 4, kind: input, shape index: {}]   ;;  %s467_s5 = inlined_call_operand.vmem [shape: f32[1,32], index: 5, kind: input, shape index: {}]   ;;  %s468_s6 = inlined_call_operand.hbm [shape: f32[16,32], index: 6, kind: output, shape index: {}]  }
   0x1   :  { %v35_v0 = vld [vmem:[%s463_s1] sm:$0xff]  ;;  %v36_v1 = vld [vmem:[%s463_s1 + $0x8] sm:$0xff]  ;;  %v37_v2 = vld [vmem:[%s463_s1 + $0x10] sm:$0xff]  ;;  %30 = vst.msk [vmem:[#allocation2 + $0x8] sm:$0xff] %vm28_vm0, %v332_v5 }
   0x2   :  { %v268_v3 = vpack.c.bf16 %v36_v1, %v35_v0  ;;  %v38_v4 = vld [vmem:[%s463_s1 + $0x18] sm:$0xff]  ;;  %29 = vst.msk [vmem:[#allocation2] sm:$0xff] %vm28_vm0, %v332_v5  ;;  %v39_v7 = vld [vmem:[%s463_s1 + $0x20] sm:$0xff]  ;;  %v40_v8 = vld [vmem:[%s463_s1 + $0x28] sm:$0xff] }
   0x3   :  { %v272_v6 = vpack.c.bf16 %v38_v4, %v37_v2  ;;  %v276_v9 = vpack.c.bf16 %v40_v8, %v39_v7  ;;  %v33_v10 = vld [vmem:[%s462_s0] sm:$0xff]  ;;  %v41_v11 = vld [vmem:[%s463_s1 + $0x30] sm:$0xff]  ;;  %v42_v12 = vld [vmem:[%s463_s1 + $0x38] sm:$0xff] }
   0x4   :  { %269 = vmatprep.subr.bf16.mxu0 %v268_v3  ;;  %265 = vmatprep.mubr.f32.mxu0 %v33_v10 }
   0x5   :  { %271 = vmatpush3.bf16.msra.mxu0 %v268_v3 }
   0x6   :  { %273 = vmatprep.subr.bf16.mxu0 %v272_v6 }
   0x7   :  { %11 = vsyncpa [#allocation4], 0  ;;  %v280_v13 = vpack.c.bf16 %v42_v12, %v41_v11  ;;  %v43_v14 = vld [vmem:[%s463_s1 + $0x40] sm:$0xff]  ;;  %v44_v15 = vld [vmem:[%s463_s1 + $0x48] sm:$0xff]  ;;  %s333_s15 = smov [#allocation3]  }
   0x8   :  { %v284_v16 = vpack.c.bf16 %v44_v15, %v43_v14  ;;  %v45_v17 = vld [vmem:[%s463_s1 + $0x50] sm:$0xff]  ;;  %v46_v18 = vld [vmem:[%s463_s1 + $0x58] sm:$0xff]  ;;  %v47_v20 = vld [vmem:[%s463_s1 + $0x60] sm:$0xff]  ;;  %s201_s16 = sshll.u32 %s333_s15, 4  ;;  %s202_s16 = int_to_ptr.vmem [resolvable:$true] %s201_s16 }
   0x9   :  { %275 = vmatpush3.bf16.msra.mxu0 %v272_v6  ;;  %v288_v19 = vpack.c.bf16 %v46_v18, %v45_v17  ;;  %v48_v21 = vld [vmem:[%s463_s1 + $0x68] sm:$0xff]  ;;  %v49_v23 = vld [vmem:[%s463_s1 + $0x70] sm:$0xff]  ;;  %v50_v24 = vld [vmem:[%s463_s1 + $0x78] sm:$0xff]  ;;  %s308_s17 = scalar_lea.vmem %s202_s16, 256  ;;  %p313_p1 = scmp.lt.s32.totalorder %s202_s16, %s202_s16 }
   0xa   :  { %277 = vmatprep.subr.bf16.mxu0 %v276_v9  ;;  %v292_v22 = vpack.c.bf16 %v48_v21, %v47_v20  ;;  %v296_v25 = vpack.c.bf16 %v50_v24, %v49_v23  ;;  %v34_v26 = vld [vmem:[%s462_s0 + $0x8] sm:$0xff]  ;;  %v31_v28 = vld [vmem:[#allocation2] sm:$0xff]  ;;  %p309_p0 = scmp.ne.s32.totalorder %s202_s16, %s308_s17  ;;  %p314_p2 = scmp.lt.s32.totalorder %s308_s17, %s308_s17 }
   0xb   :  { %v32_v27 = vld [vmem:[#allocation2 + $0x8] sm:$0xff]  ;;  %v212_v33 = vld [vmem:[%s464_s2] ss:$0 sm:$0xff] }
   0xc   :  { %v145_v36 = vld [vmem:[%s465_s3] sm:$0xff]  ;;  %v146_v39 = vld [vmem:[%s465_s3 + $0x8] sm:$0xff]  ;;  %p315_p3 = por %p314_p2, %p313_p1 }
   0xd   :  { %279 = vmatpush3.bf16.msra.mxu0 %v276_v9  ;;  %v213_v61 = vld [vmem:[%s466_s4] ss:$0 sm:$0xff] }
   0xe   :  { %281 = vmatprep.subr.bf16.mxu0 %v280_v13  ;;  %v214_v63 = vld [vmem:[%s467_s5] ss:$0 sm:$0xff]  ;;  %p316_p4 = pnand %p315_p3, %p309_p0 }
  0x11   :  { %283 = vmatpush3.bf16.msra.mxu0 %v280_v13 }
  0x12   :  { %285 = vmatprep.subr.bf16.mxu0 %v284_v16 }
  0x15   :  { %287 = vmatpush3.bf16.msra.mxu0 %v284_v16 }
  0x16   :  { %289 = vmatprep.subr.bf16.mxu0 %v288_v19 }
  0x19   :  { %291 = vmatpush3.bf16.msra.mxu0 %v288_v19 }
  0x1a   :  { %293 = vmatprep.subr.bf16.mxu0 %v292_v22 }
  0x1d   :  { %295 = vmatpush3.bf16.msra.mxu0 %v292_v22 }
  0x1e   :  { %297 = vmatprep.subr.bf16.mxu0 %v296_v25 }
  0x21   :  { %299 = vmatpush3.bf16.msra.mxu0 %v296_v25 }
  0x24   :  { %266 = vmatmul.mubr.f32.vlgmr.msra.gmra.mrb[0].mxu0 %v34_v26 }
  0xf7   :  { %v267_v29 = vpop.f32.mrb[0].mxu0 }
  0xf8   :  { %v127_v30 = vadd.f32 %v267_v29, %v32_v27  ;;  %v117_v31 = vpop.f32.mrb[1].mxu0 }
  0xf9   :  { %v126_v32 = vadd.f32 %v117_v31, %v31_v28 }
  0xfa   :  { %130 = vst.msk [vmem:[#allocation2 + $0x8] sm:$0xff] %vm28_vm0, %v127_v30 }
  0xfb   :  { %129 = vst.msk [vmem:[#allocation2] sm:$0xff] %vm28_vm0, %v126_v32 }
 0x101   :  { %v135_v34 = vld [vmem:[#allocation2 + $0x8] sm:$0xff] }
 0x102   :  { %v134_v35 = vld [vmem:[#allocation2] sm:$0xff]  ;;  %v144_v38 = vadd.f32 %v212_v33, %v135_v34 }
 0x103   :  { %v143_v37 = vadd.f32 %v212_v33, %v134_v35 }
 0x104   :  { %v148_v42 = vadd.f32 %v146_v39, %v144_v38 }
 0x105   :  { %v147_v40 = vadd.f32 %v145_v36, %v143_v37 }
 0x106   :  { %v152_v43 = vsel %vm28_vm0, %v148_v42, 0.0 }
 0x107   :  { %v149_v41 = vsel %vm28_vm0, %v147_v40, 0.0 }
 0x108   :  { %150 = vadd.xlane.f32.xlu0 %v149_v41 }
 0x10c   :  { %153 = vadd.xlane.f32.xlu0 %v152_v43 }
 0x195   :  { %v151_v44 = vpop.xlane.xlu0 %150 }
 0x196   :  { %v156_v45 = vmul.f32 0.03125, %v151_v44 }
 0x198   :  { %v158_v46 = vsub.f32 %v147_v40, %v156_v45 }
 0x199   :  { %v154_v47 = vpop.xlane.xlu0 %153 }
 0x19a   :  { %v157_v48 = vmul.f32 0.03125, %v154_v47  ;;  %v160_v49 = vmul.f32 %v158_v46, %v158_v46 }
 0x19c   :  { %v159_v50 = vsub.f32 %v148_v42, %v157_v48  ;;  %v162_v51 = vsel %vm28_vm0, %v160_v49, 0.0 }
 0x19d   :  { %163 = vadd.xlane.f32.xlu1 %v162_v51 }
 0x19e   :  { %v161_v52 = vmul.f32 %v159_v50, %v159_v50 }
 0x1a0   :  { %v165_v53 = vsel %vm28_vm0, %v161_v52, 0.0 }
 0x1a1   :  { %166 = vadd.xlane.f32.xlu1 %v165_v53 }
 0x22a   :  { %v164_v54 = vpop.xlane.xlu1 %163 }
 0x22b   :  { %v168_v55 = vmul.f32 0.03125, %v164_v54 }
 0x22d   :  { %v170_v56 = vadd.f32 1e-12, %v168_v55 }
 0x22e   :  { %v167_v57 = vpop.xlane.xlu1 %166 }
 0x22f   :  { %304 = vrsqrt.f32 %v170_v56  ;;  %v169_v58 = vmul.f32 0.03125, %v167_v57 }
 0x231   :  { %v171_v59 = vadd.f32 1e-12, %v169_v58 }
 0x233   :  { %306 = vrsqrt.f32 %v171_v59 }
 0x239   :  { %v305_v60 = vpop.eup %304 }
 0x23a   :  { %v174_v62 = vmul.f32 %v305_v60, %v158_v46 }
 0x23c   :  { %v183_v0 = vmul.f32 %v213_v61, %v174_v62 }
 0x23d   :  { %v307_v1 = vpop.eup %306 }
 0x23e   :  { %v175_v2 = vmul.f32 %v307_v1, %v159_v50  ;;  %v192_v3 = vadd.f32 %v214_v63, %v183_v0 }
 0x240   :  { %v184_v4 = vmul.f32 %v213_v61, %v175_v2  ;;  %194 = vst.msk [vmem:[#allocation3] sm:$0xff] %vm28_vm0, %v192_v3 }
 0x242   :  { %v193_v5 = vadd.f32 %v214_v63, %v184_v4 }
 0x244   :  { %195 = vst.msk [vmem:[#allocation3 + $0x8] sm:$0xff] %vm28_vm0, %v193_v5 }
 0x245   :  { %319 = shalt.err (!%p316_p4)
}
 0x246   :  { %s320_s18 = scalar_lea.hbm %s468_s6, 256 }
 0x247   :  { %p321_p5 = scmp.ne.s32.totalorder %s468_s6, %s320_s18  ;;  %p324_p6 = scmp.lt.u32.totalorder %s320_s18, %s468_s6 }
 0x249   :  { %p326_p7 = pnand %p324_p6, %p321_p5 }
 0x24b   :  { %329 = shalt.err (!%p326_p7)
}
 0x24c   :  { %s334_s23 = smov 128   ;;  %s335_s24 = smov 8  }
 0x24d   :  { %207 = dma.vmem_to_hbm [thread:$0]  %s202_s16, 256, %s468_s6, [#allocation4], %s334_s23, %s334_s23, %s335_s24  }
 0x24e   :  { %330 = dma.done.wait [#allocation4], 256  }
 0x24f   :  { %331 = vsyncadd [#allocation4], 4294967040 }
 0x250   :  { %211 = vsyncpa [#allocation4], 1 }

</bundles_post_ra>
